<compile_context>
chip_gen: v5e
topology: v5e:2x2
jax: 0.10.0
libtpu: 0.0.40
codegen_flags: <defaults>
</compile_context>

<pallas_src>
import functools

import jax
import jax.numpy as jnp
from jax import lax
from jax.experimental import pallas as pl
from jax.experimental.pallas import tpu as pltpu

_MIB = 1024 * 1024
_LANE = 128
# Cap on the feature (reduction) tile.  theta is fed as a (tile_d, 1) column so
# both MXU operands are consumed natively (no transpose of the big x tile); a
# column is lane-padded in VMEM (~tile_d * 512 B for f32), so keep it modest
# and D-tile anything wider (review item 7).
_MAX_TILE_D = 2048


def _round_up(v, m):
    return ((v + m - 1) // m) * m


def _tpu_vmem_capacity_bytes():
    """Physical per-core VMEM; conservative (v7x-sized) fallback if unknown."""
    try:
        return int(pltpu.get_tpu_info().vmem_capacity_bytes)
    except Exception:
        return 64 * _MIB


def _x_tile_budget_bytes(vmem_phys):
    # Generation-aware x-tile target (review items 1/2/8):
    #   v7x  (64 MiB/TC): ~6 MiB keeps 3 pipelined buffers well under the cap.
    #   v5e/v6e (128 MiB): ~8 MiB with vmem_limit_bytes raised to >=32 MiB.
    return 6 * _MIB if vmem_phys <= 64 * _MIB else 8 * _MIB


def _choose_tiles(n, d, itemsize, x_tile_budget):
    tile_d = d if d <= _MAX_TILE_D else _MAX_TILE_D

    rows = x_tile_budget // max(1, tile_d * itemsize)
    rows = max(_LANE, (rows // _LANE) * _LANE)   # lane-dense output blocks
    if rows >= n:
        # The whole batch fits in one tile.  Still split into >=4 row tiles so
        # the "parallel" grid axis can shard across v7x's two TensorCores
        # (review item 3); on 1-TC chips the extra steps cost ~0.35 us each.
        rows = max(_LANE, _round_up(pl.cdiv(n, 4), _LANE))
        if rows >= n:
            rows = n                             # tiny batch: block == full dim
    return rows, tile_d


def _vmem_limit_bytes(tile_n, tile_d, itemsize, vmem_phys):
    # 3 x buffers (triple-buffered stream) + 2 lane-padded theta columns +
    # double-buffered (1, tile_n) f32 output + accumulator scratch, plus
    # 25% + 2 MiB headroom for Mosaic internals.
    x_bytes = 3 * tile_n * tile_d * itemsize
    theta_bytes = 2 * _round_up(tile_d, 8) * _LANE * itemsize
    out_bytes = 2 * 8 * _round_up(tile_n, _LANE) * 4
    acc_bytes = 8 * _round_up(tile_n, _LANE) * 4
    need = int((x_bytes + theta_bytes + out_bytes + acc_bytes) * 1.25) + 2 * _MIB
    limit = max(32 * _MIB, need)
    # Never ask for more than the chip can give (v7x: 64 MiB per TensorCore).
    return min(limit, max(32 * _MIB, vmem_phys - 16 * _MIB))


def _logreg_kernel(theta_ref, x_ref, bias_ref, o_ref, acc_ref, *, valid_last_d):
    # theta_ref: (tile_d, 1) VMEM column (resident when the D grid has 1 step)
    # x_ref:     (tile_n, tile_d) VMEM, streamed per grid step
    # bias_ref:  (1,) SMEM scalar
    # o_ref:     (1, tile_n) VMEM, lane-dense output row
    # acc_ref:   (1, tile_n) f32 VMEM accumulator scratch
    k = pl.program_id(1)
    last_k = pl.num_programs(1) - 1

    @pl.when(k == 0)
    def _init():
        acc_ref[...] = jnp.zeros_like(acc_ref)

    x = x_ref[...]
    if valid_last_d is not None:
        # Ragged last feature tile: out-of-bounds columns hold undefined data,
        # so zero them before the reduction (theta was zero-padded wrapper-side,
        # so padded terms contribute exactly 0).
        width = jnp.where(k == last_k, valid_last_d, x.shape[1])
        lane = lax.broadcasted_iota(jnp.int32, x.shape, 1)
        x = jnp.where(lane < width, x, 0)

    # MXU-natural matmul: (tile_n, tile_d) @ (tile_d, 1) -> (tile_n, 1).
    # Neither operand needs a transpose; only the tiny result is re-laid out
    # into the lane-dense accumulator (review item 4).
    z = lax.dot_general(
        x,
        theta_ref[...],
        dimension_numbers=(((1,), (0,)), ((), ())),
        preferred_element_type=jnp.float32,
    )
    acc_ref[...] += jnp.transpose(z, (1, 0))

    @pl.when(k == last_k)
    def _finalize():
        o_ref[...] = jax.nn.sigmoid(acc_ref[...] + bias_ref[0]).astype(o_ref.dtype)


def _build_call(*, n, tile_n, tile_d, num_n_tiles, num_d_tiles, valid_last_d,
                vmem_limit, flops, bytes_accessed, x_pipeline_mode):
    kernel = functools.partial(_logreg_kernel, valid_last_d=valid_last_d)

    x_spec_kwargs = {}
    if x_pipeline_mode is not None:
        x_spec_kwargs["pipeline_mode"] = x_pipeline_mode

    return pl.pallas_call(
        kernel,
        out_shape=jax.ShapeDtypeStruct((1, n), jnp.float32),
        grid_spec=pltpu.PrefetchScalarGridSpec(
            num_scalar_prefetch=0,
            grid=(num_n_tiles, num_d_tiles),
            in_specs=[
                # theta column: MXU-natural RHS; resident when num_d_tiles == 1.
                pl.BlockSpec((tile_d, 1), lambda i, k: (k, 0)),
                # x: the only large HBM stream (row x feature tiles, pipelined).
                pl.BlockSpec((tile_n, tile_d), lambda i, k: (i, k), **x_spec_kwargs),
                # bias: scalar in SMEM (no vector load burned).
                pl.BlockSpec(memory_space=pltpu.MemorySpace.SMEM),
            ],
            out_specs=pl.BlockSpec((1, tile_n), lambda i, k: (0, i)),
            scratch_shapes=[pltpu.VMEM((1, tile_n), jnp.float32)],
        ),
        compiler_params=pltpu.CompilerParams(
            dimension_semantics=("parallel", "arbitrary"),
            vmem_limit_bytes=int(vmem_limit),
        ),
        cost_estimate=pl.CostEstimate(
            flops=int(flops),
            transcendentals=int(n),
            bytes_accessed=int(bytes_accessed),
        ),
    )


def logistic_regression_forward(x, theta, bias, *, tile_n=None):
    """sigmoid(x @ theta + bias).flatten(), as a Pallas TPU streaming kernel.

    x: (N, D); theta: (D, 1); bias: (1,) or scalar.
    tile_n (optional) must be a multiple of 128 or >= N.
    Note: theta is streamed at x.dtype (accumulation stays f32); with bf16 x
    this trades a little weight precision for ~2x less HBM traffic on this
    bandwidth-bound kernel (review item 5).
    """
    n, d = x.shape
    assert theta.shape == (d, 1), theta.shape
    itemsize = jnp.dtype(x.dtype).itemsize

    vmem_phys = _tpu_vmem_capacity_bytes()
    auto_tile_n, tile_d = _choose_tiles(n, d, itemsize, _x_tile_budget_bytes(vmem_phys))
    if tile_n is None:
        tile_n = auto_tile_n

    num_n_tiles = pl.cdiv(n, tile_n)
    num_d_tiles = pl.cdiv(d, tile_d)

    # theta as an MXU-natural (d, 1) column in the streaming dtype; zero-pad the
    # reduction dim so every theta block is fully in-bounds (the matching ragged
    # x columns are masked in-kernel).
    theta_col = theta.astype(x.dtype)
    d_pad = num_d_tiles * tile_d
    if d_pad != d:
        theta_col = jnp.pad(theta_col, ((0, d_pad - d), (0, 0)))
    valid_last_d = None if d_pad == d else d - (num_d_tiles - 1) * tile_d

    bias_smem = jnp.asarray(bias, dtype=jnp.float32).reshape(1)

    call_kwargs = dict(
        n=n, tile_n=tile_n, tile_d=tile_d,
        num_n_tiles=num_n_tiles, num_d_tiles=num_d_tiles,
        valid_last_d=valid_last_d,
        vmem_limit=_vmem_limit_bytes(tile_n, tile_d, itemsize, vmem_phys),
        flops=2 * n * d,
        bytes_accessed=n * d * itemsize + d * itemsize + n * 4,
    )

    out = None
    # Review item 6: prefer a triple-buffered x stream (per-step compute is ~0,
    # so DMA issue latency is exposed); fall back cleanly to the default
    # double-buffered pipeline if this jax/Mosaic build rejects pipeline_mode.
    if hasattr(pl, "Buffered"):
        try:
            out = _build_call(x_pipeline_mode=pl.Buffered(3), **call_kwargs)(
                theta_col, x, bias_smem)
        except Exception:
            out = None
    if out is None:
        out = _build_call(x_pipeline_mode=None, **call_kwargs)(theta_col, x, bias_smem)

    # torch .flatten(): (1, N) -> (N,)
    return out.reshape(-1)


if __name__ == "__main__":
    key = jax.random.PRNGKey(0)
    k_theta, k_bias, k_x, k_x2, k_x3, k_theta3 = jax.random.split(key, 6)

    # Shapes consistent with the module: LogisticRegression(size=D), small batch.
    N, D = 8, 128
    theta = jax.random.normal(k_theta, (D, 1), dtype=jnp.float32)
    bias = jax.random.normal(k_bias, (1,), dtype=jnp.float32)
    x = jax.random.normal(k_x, (N, D), dtype=jnp.float32)

    y = jax.block_until_ready(logistic_regression_forward(x, theta, bias))
    y_ref = jax.nn.sigmoid(x @ theta + bias).reshape(-1)
    assert y.shape == (N,)
    assert jnp.allclose(y, y_ref, atol=1e-4, rtol=1e-4)

    # Multi-tile grid with a ragged last row tile.
    N2 = 300
    x2 = jax.random.normal(k_x2, (N2, D), dtype=jnp.float32)
    y2 = jax.block_until_ready(logistic_regression_forward(x2, theta, bias, tile_n=128))
    y2_ref = jax.nn.sigmoid(x2 @ theta + bias).reshape(-1)
    assert y2.shape == (N2,)
    assert jnp.allclose(y2, y2_ref, atol=1e-4, rtol=1e-4)

    # Wide-feature path: D-tiled reduction with ragged last feature tile and a
    # ragged last row tile (exercises the accumulator + in-kernel masking).
    N3, D3 = 200, 2500
    theta3 = jax.random.normal(k_theta3, (D3, 1), dtype=jnp.float32) / jnp.sqrt(D3)
    x3 = jax.random.normal(k_x3, (N3, D3), dtype=jnp.float32)
    y3 = jax.block_until_ready(logistic_regression_forward(x3, theta3, bias))
    y3_ref = jax.nn.sigmoid(x3 @ theta3 + bias).reshape(-1)
    assert y3.shape == (N3,)
    assert jnp.allclose(y3, y3_ref, atol=1e-2, rtol=1e-2)

    # bf16 streaming path (review item 5): kernel consumes x (and theta) in bf16.
    xb = x2.astype(jnp.bfloat16)
    yb = jax.block_until_ready(logistic_regression_forward(xb, theta, bias))
    theta_b = theta.astype(jnp.bfloat16).astype(jnp.float32)
    yb_ref = jax.nn.sigmoid(xb.astype(jnp.float32) @ theta_b + bias).reshape(-1)
    assert yb.shape == (N2,)
    assert jnp.allclose(yb, yb_ref, atol=1e-2, rtol=1e-2)

    print("KERNEL_OK")
</pallas_src>

<mosaic_0001>
module attributes {stable_mosaic.version = 11 : i64} {
  func.func @_logreg_kernel(%arg0: i32, %arg1: i32, %arg2: memref<128x1xf32, #tpu.memory_space<vmem>>, %arg3: memref<8x128xf32, #tpu.memory_space<vmem>>, %arg4: memref<1xf32, #tpu.memory_space<smem>>, %arg5: memref<1x8xf32, #tpu.memory_space<vmem>>, %arg6: memref<1x8xf32, #tpu.memory_space<vmem>>) attributes {dimension_semantics = [#tpu.dimension_semantics<parallel>, #tpu.dimension_semantics<arbitrary>], iteration_bounds = array<i64: 1, 1>, scalar_prefetch = 0 : i64, scratch_operands = 1 : i64, tpu.core_type = #tpu.core_type<tc>, window_params = [{transform_indices = @transform_0, window_bounds = array<i64: 128, 1>}, {transform_indices = @transform_1, window_bounds = array<i64: 8, 128>}, {transform_indices = @transform_2, window_bounds = array<i64: 1>}, {transform_indices = @transform_3, window_bounds = array<i64: 1, 8>}]} {
    %c0_i32 = arith.constant 0 : i32
    %0 = arith.cmpi eq, %arg1, %c0_i32 : i32
    %1 = arith.extui %0 : i1 to i32
    %c0_i32_0 = arith.constant 0 : i32
    %2 = arith.cmpi ne, %1, %c0_i32_0 : i32
    scf.if %2 {
      %cst_10 = arith.constant 0.000000e+00 : f32
      %13 = vector.broadcast %cst_10 : f32 to vector<1x8xf32>
      %c0_11 = arith.constant 0 : index
      %c0_12 = arith.constant 0 : index
      %14 = vector.load %arg6[%c0_11, %c0_12] : memref<1x8xf32, #tpu.memory_space<vmem>>, vector<1x8xf32>
      tpu.vector_store %arg6[%c0_11, %c0_12], %13 {strides = array<i32>} : memref<1x8xf32, #tpu.memory_space<vmem>>, vector<1x8xf32>,
    } else {
    }
    %c0 = arith.constant 0 : index
    %c0_1 = arith.constant 0 : index
    %3 = vector.load %arg3[%c0, %c0_1] : memref<8x128xf32, #tpu.memory_space<vmem>>, vector<8x128xf32>
    %c0_2 = arith.constant 0 : index
    %c0_3 = arith.constant 0 : index
    %4 = vector.load %arg2[%c0_2, %c0_3] : memref<128x1xf32, #tpu.memory_space<vmem>>, vector<128x1xf32>
    %cst = arith.constant dense<0.000000e+00> : vector<8x1xf32>
    %5 = tpu.matmul %3, %4, %cst {dimension_numbers = #tpu.dot_dimension_numbers<[1], [0], [0], [1], [0, 0, 1, 1], [], []>} : vector<8x128xf32>, vector<128x1xf32>, vector<8x1xf32> -> vector<8x1xf32>
    %c0_4 = arith.constant 0 : index
    %c0_5 = arith.constant 0 : index
    %6 = vector.load %arg6[%c0_4, %c0_5] : memref<1x8xf32, #tpu.memory_space<vmem>>, vector<1x8xf32>
    %7 = tpu.transpose %5, [1, 0] : vector<8x1xf32> -> vector<1x8xf32>
    %8 = arith.addf %6, %7 : vector<1x8xf32>
    %c0_6 = arith.constant 0 : index
    %c0_7 = arith.constant 0 : index
    %9 = vector.load %arg6[%c0_6, %c0_7] : memref<1x8xf32, #tpu.memory_space<vmem>>, vector<1x8xf32>
    tpu.vector_store %arg6[%c0_6, %c0_7], %8 {strides = array<i32>} : memref<1x8xf32, #tpu.memory_space<vmem>>, vector<1x8xf32>,
    %c0_i32_8 = arith.constant 0 : i32
    %10 = arith.cmpi eq, %arg1, %c0_i32_8 : i32
    %11 = arith.extui %10 : i1 to i32
    %c0_i32_9 = arith.constant 0 : i32
    %12 = arith.cmpi ne, %11, %c0_i32_9 : i32
    scf.if %12 {
      %c0_10 = arith.constant 0 : index
      %c0_11 = arith.constant 0 : index
      %13 = vector.load %arg6[%c0_10, %c0_11] : memref<1x8xf32, #tpu.memory_space<vmem>>, vector<1x8xf32>
      %c0_12 = arith.constant 0 : index
      %14 = memref.load %arg4[%c0_12] : memref<1xf32, #tpu.memory_space<smem>>
      %15 = vector.broadcast %14 : f32 to vector<1x8xf32>
      %16 = arith.addf %13, %15 : vector<1x8xf32>
      %17 = arith.negf %16 : vector<1x8xf32>
      %18 = math.exp %17 : vector<1x8xf32>
      %cst_13 = arith.constant 1.000000e+00 : f32
      %19 = vector.broadcast %cst_13 : f32 to vector<1x8xf32>
      %20 = arith.addf %19, %18 : vector<1x8xf32>
      %21 = arith.divf %19, %20 : vector<1x8xf32>
      %c0_14 = arith.constant 0 : index
      %c0_15 = arith.constant 0 : index
      %22 = vector.load %arg5[%c0_14, %c0_15] : memref<1x8xf32, #tpu.memory_space<vmem>>, vector<1x8xf32>
      tpu.vector_store %arg5[%c0_14, %c0_15], %21 {strides = array<i32>} : memref<1x8xf32, #tpu.memory_space<vmem>>, vector<1x8xf32>,
    } else {
    }
    return
  }
  func.func @transform_0(%arg0: i32, %arg1: i32) -> (i32, i32) {
    %c0_i32 = arith.constant 0 : i32
    %c0_i32_0 = arith.constant 0 : i32
    return %arg1, %c0_i32 : i32, i32
  }
  func.func @transform_1(%arg0: i32, %arg1: i32) -> (i32, i32) {
    %c0_i32 = arith.constant 0 : i32
    return %arg0, %arg1 : i32, i32
  }
  func.func @transform_2(%arg0: i32, %arg1: i32) -> i32 {
    %c0_i32 = arith.constant 0 : i32
    %c0_i32_0 = arith.constant 0 : i32
    return %c0_i32 : i32
  }
  func.func @transform_3(%arg0: i32, %arg1: i32) -> (i32, i32) {
    %c0_i32 = arith.constant 0 : i32
    %c0_i32_0 = arith.constant 0 : i32
    return %c0_i32, %arg0 : i32, i32
  }
}

</mosaic_0001>

<bundles_post_ra>
// kernel: tpu_custom_call.1
= control target key start
LH: loop header
LB: loop body
LE: loop exit
PB: predicated region body
PF: predicated region fallthrough
CT: control target
= control target key end

     0   :  { %s253_s0 = inlined_call_operand.vmem [shape: f32[128,1], index: 0, kind: input, shape index: {}]   ;;  %s254_s1 = inlined_call_operand.vmem [shape: f32[8,128], index: 1, kind: input, shape index: {}]   ;;  %s255_s2 = inlined_call_operand.<no memory space> [shape: f32[1], index: 2, kind: input, shape index: {}]   ;;  %s256_s3 = inlined_call_operand.hbm [shape: f32[1,8], index: 3, kind: output, shape index: {}]  }
   0x1   :  { %v38_v0 = vld [vmem:[%s253_s0 + $0x78] sm:$0xff]  ;;  %v37_v1 = vld [vmem:[%s253_s0 + $0x70] sm:$0xff]  ;;  %v36_v2 = vld [vmem:[%s253_s0 + $0x68] sm:$0xff] }
   0x2   :  { %39 = vmatpush.msra.mxu0 %v38_v0  ;;  %v35_v3 = vld [vmem:[%s253_s0 + $0x60] sm:$0xff] }
   0x4   :  { %40 = vmatpush.msra.mxu0 %v37_v1 }
   0x6   :  { %41 = vmatpush.msra.mxu0 %v36_v2 }
   0x7   :  { %9 = vsyncpa [#allocation5], 0  ;;  %v34_v4 = vld [vmem:[%s253_s0 + $0x58] sm:$0xff]  ;;  %v33_v5 = vld [vmem:[%s253_s0 + $0x50] sm:$0xff]  ;;  %vm20_vm0 = vcmask 57344   ;;  %v171_v18 = vmov 0.0   ;;  %v100_v22 = vstv %s255_s2 }
   0x8   :  { %42 = vmatpush.msra.mxu0 %v35_v3  ;;  %v32_v6 = vld [vmem:[%s253_s0 + $0x48] sm:$0xff]  ;;  %v31_v7 = vld [vmem:[%s253_s0 + $0x40] sm:$0xff]  ;;  %v30_v8 = vld [vmem:[%s253_s0 + $0x38] sm:$0xff]  ;;  %21 = vst.msk [vmem:[#allocation2] sm:$0x1] %vm20_vm0, %v171_v18  ;;  %s129_s2 = sshll.u32 %s256_s3, 4  ;;  %s130_s2 = int_to_ptr.hbm [resolvable:$true] %s129_s2 }
   0x9   :  { %v29_v9 = vld [vmem:[%s253_s0 + $0x30] sm:$0xff]  ;;  %v28_v10 = vld [vmem:[%s253_s0 + $0x28] sm:$0xff]  ;;  %v27_v11 = vld [vmem:[%s253_s0 + $0x20] sm:$0xff] }
   0xa   :  { %43 = vmatpush.msra.mxu0 %v34_v4  ;;  %v26_v12 = vld [vmem:[%s253_s0 + $0x18] sm:$0xff]  ;;  %v25_v13 = vld [vmem:[%s253_s0 + $0x10] sm:$0xff]  ;;  %v24_v14 = vld [vmem:[%s253_s0 + $0x8] sm:$0xff] }
   0xb   :  { %v23_v15 = vld [vmem:[%s253_s0] sm:$0xff] }
   0xc   :  { %44 = vmatpush.msra.mxu0 %v33_v5  ;;  %v22_v16 = vld [vmem:[%s254_s1] sm:$0xff]  ;;  %s172_s1 = smov [#allocation4]  }
   0xd   :  { %s127_s20 = sshll.u32 %s172_s1, 4  ;;  %s128_s20 = int_to_ptr.vmem [resolvable:$true] %s127_s20 }
   0xe   :  { %45 = vmatpush.msra.mxu0 %v32_v6 }
   0xf   :  { %v59_v19 = vld [vmem:[#allocation2] sm:$0x1] }
  0x10   :  { %46 = vmatpush.msra.mxu0 %v31_v7 }
  0x12   :  { %47 = vmatpush.msra.mxu0 %v30_v8 }
  0x14   :  { %48 = vmatpush.msra.mxu0 %v29_v9 }
  0x16   :  { %49 = vmatpush.msra.mxu0 %v28_v10 }
  0x18   :  { %50 = vmatpush.msra.mxu0 %v27_v11 }
  0x1a   :  { %51 = vmatpush.msra.mxu0 %v26_v12 }
  0x1c   :  { %52 = vmatpush.msra.mxu0 %v25_v13 }
  0x1e   :  { %53 = vmatpush.msra.mxu0 %v24_v14 }
  0x20   :  { %54 = vmatpush.msra.mxu0 %v23_v15 }
  0x21   :  { %55 = vmatmul.f32.vlgmr.msra.gmra.mxu0 %v22_v16 }
  0x9e   :  { %v56_v17 = vpop.f32.mrf.mxu0 }
  0x9f   :  { %60 = vxpose.xlu0.b32.start.end [1/1] (short) (narrow) %v56_v17, 8 }
 0x143   :  { %v76_v20 = vpop.trf.xlu0 }
 0x144   :  { %v92_v21 = vadd.f32 %v76_v20, %v59_v19 }
 0x146   :  { %94 = vst.msk [vmem:[#allocation2] sm:$0x1] %vm20_vm0, %v92_v21 }
 0x14d   :  { %v98_v23 = vld [vmem:[#allocation2] sm:$0x1] }
 0x14e   :  { %v101_v24 = vadd.f32 %v100_v22, %v98_v23 }
 0x150   :  { %v138_v25 = vmul.f32 -1.442695, %v101_v24 }
 0x152   :  { %141 = vpow2.f32 %v138_v25 }
 0x158   :  { %v142_v26 = vpop.eup %141 }
 0x159   :  { %v105_v27 = vadd.f32 1.0, %v142_v26 }
 0x15b   :  { %143 = vrcp.f32 %v105_v27  ;;  %v117_v31 = vand.u32 2147483648, %v105_v27  ;;  %v115_v33 = vand.u32 2147483647, %v105_v27  ;;  %vm111_vm2 = vweird.f32 %v105_v27 }
 0x15d   :  { %v118_v35 = vor.u32 1.1754944e-38, %v117_v31  ;;  %vm116_vm4 = vcmp.eq.f32.partialorder %v115_v33, 8.507059e+37 }
 0x161   :  { %v144_v28 = vpop.eup %143 }
 0x162   :  { %v107_v29 = vmul.f32 %v144_v28, %v105_v27  ;;  %vm112_vm1 = vweird.f32 %v144_v28 }
 0x163   :  { %vm113_vm3 = vmor %vm111_vm2, %vm112_vm1 }
 0x164   :  { %v108_v30 = vsub.f32 1.0, %v107_v29 }
 0x166   :  { %v109_v32 = vmul.f32 %v144_v28, %v108_v30 }
 0x168   :  { %v110_v34 = vadd.f32 %v144_v28, %v109_v32 }
 0x16a   :  { %v114_v36 = vsel %vm113_vm3, %v144_v28, %v110_v34 }
 0x16b   :  { %v119_v37 = vsel %vm116_vm4, %v118_v35, %v114_v36 }
 0x16c   :  { %121 = vst.msk [vmem:[#allocation4] sm:$0x1] %vm20_vm0, %v119_v37 }
 0x16d   :  { %132 = dma.vmem_to_hbm [thread:$0]  %s128_s20, 16, %s130_s2, [#allocation5]  }
 0x16e   :  { %169 = dma.done.wait [#allocation5], 16  }
 0x16f   :  { %170 = vsyncadd [#allocation5], 4294967280 }
 0x170   :  { %137 = vsyncpa [#allocation5], 1 }

</bundles_post_ra>
